<compile_context>
chip_gen: v7x
topology: tpu7x:2x2x1
jax: 0.10.0
libtpu: 0.0.40
codegen_flags: <defaults>
</compile_context>

<pallas_src>
import jax
import jax.numpy as jnp
from jax.experimental import pallas as pl
from jax.experimental.pallas import tpu as pltpu

LANE = 128          # vreg lane width (last dim of every block)
BLOCK_ROWS = 2048   # (2048, 128) f32 = 1 MiB per input per block


def _round_up(x, m):
    return ((x + m - 1) // m) * m


def _loss_kernel(n_ref, lam_ref, pred_ref, target_ref, conf_ref,
                 sum_ref, cnt_ref):
    c = pl.program_id(0)            # "parallel" axis: per-core partial
    i = pl.program_id(1)            # "arbitrary" axis: reduction steps
    steps = pl.num_programs(1)

    @pl.when(i == 0)
    def _():
        sum_ref[...] = jnp.zeros_like(sum_ref)
        cnt_ref[...] = jnp.zeros_like(cnt_ref)

    n = n_ref[0]                    # true (unpadded) element count
    lam = lam_ref[0]

    t = target_ref[...]
    p = pred_ref[...]
    ci = conf_ref[...] * lam

    bm = t.shape[0]
    # Logical flat-element offset of this block (logical block id = c*steps+i).
    # Blocks whose logical id runs past the data are clamped in the index_map
    # (so the DMA stays in-bounds) and get base >= n -> fully masked here.
    base = (c * steps + i) * (bm * LANE)
    row = jax.lax.broadcasted_iota(jnp.int32, (bm, LANE), 0)
    col = jax.lax.broadcasted_iota(jnp.int32, (bm, LANE), 1)
    lin = row * LANE + col
    in_range = lin < (n - base)

    valid = (t > 0.0) & in_range

    r = (t - p) / ci
    # sqrt output is already non-negative -> torch's .abs() is dead work.
    diff = jnp.sqrt(r * r + 4.0 * jnp.log1p(ci))

    contrib = jnp.where(valid, diff, 0.0)
    ones = jnp.where(valid, 1.0, 0.0)

    # Fold (bm, 128) -> (8, 128) with pure VPU vreg adds; accumulate into the
    # resident output block.  Final cross-lane reduce happens in the wrapper.
    sum_ref[...] += jnp.sum(contrib.reshape(-1, 8, LANE), axis=0)
    cnt_ref[...] += jnp.sum(ones.reshape(-1, 8, LANE), axis=0)


def uncertainty_l1_loss(pred, target, conf_inv, conf_lambda):
    assert pred.shape == target.shape == conf_inv.shape, 'inconsistent dimensions'
    n = int(pred.size)

    def flat(x):
        return jnp.asarray(x, jnp.float32).reshape(-1)

    p, t, ci = flat(pred), flat(target), flat(conf_inv)

    rows_needed = pl.cdiv(max(n, 1), LANE)
    if rows_needed <= BLOCK_ROWS:
        rows = _round_up(rows_needed, 8)   # single (rows,128) block per core
        bm = rows
    else:
        rows = rows_needed
        bm = BLOCK_ROWS

    n_total = rows * LANE
    if n_total != n:
        # Only when n is not lane/row aligned (rare for NCHW); the in-kernel
        # index mask makes the pad values irrelevant for correctness.
        pad = n_total - n
        p = jnp.pad(p, (0, pad))
        t = jnp.pad(t, (0, pad))                       # target 0 -> invalid
        ci = jnp.pad(ci, (0, pad), constant_values=1.0)

    p2 = p.reshape(rows, LANE)
    t2 = t.reshape(rows, LANE)
    c2 = ci.reshape(rows, LANE)

    total_blocks = pl.cdiv(rows, bm)
    steps = pl.cdiv(total_blocks, 2)      # split reduction across 2 cores (v7x)

    n_arr = jnp.asarray([n], jnp.int32)
    lam_arr = jnp.asarray([conf_lambda], jnp.float32).reshape(1)

    def data_map(c, i):
        # Clamp so no block start lies fully outside the array; clamped
        # (duplicate) blocks are masked out in the kernel via the index mask.
        return (jnp.minimum(c * steps + i, total_blocks - 1), 0)

    sums, cnts = pl.pallas_call(
        _loss_kernel,
        out_shape=(jax.ShapeDtypeStruct((2 * 8, LANE), jnp.float32),
                   jax.ShapeDtypeStruct((2 * 8, LANE), jnp.float32)),
        grid_spec=pltpu.PrefetchScalarGridSpec(
            num_scalar_prefetch=0,
            grid=(2, steps),
            in_specs=[
                pl.BlockSpec(memory_space=pltpu.SMEM),   # n (true element count)
                pl.BlockSpec(memory_space=pltpu.SMEM),   # conf_lambda
                pl.BlockSpec((bm, LANE), data_map),      # pred
                pl.BlockSpec((bm, LANE), data_map),      # target
                pl.BlockSpec((bm, LANE), data_map),      # conf_inv
            ],
            out_specs=[
                pl.BlockSpec((8, LANE), lambda c, i: (c, 0)),  # per-core sum
                pl.BlockSpec((8, LANE), lambda c, i: (c, 0)),  # per-core count
            ],
        ),
        compiler_params=pltpu.CompilerParams(
            dimension_semantics=("parallel", "arbitrary"),
        ),
    )(n_arr, lam_arr, p2, t2, c2)

    # Tiny final reduction + mean over valid elements (0/0 -> NaN, like torch
    # .mean() on an empty selection).
    return jnp.sum(sums) / jnp.sum(cnts)


def _reference(pred, target, conf_inv, conf_lambda):
    valid = target > 0
    c = conf_inv * conf_lambda
    diff = jnp.sqrt((target - pred) ** 2 / c ** 2 + 4.0 * jnp.log1p(c))
    diff = jnp.abs(diff)
    return jnp.sum(jnp.where(valid, diff, 0.0)) / jnp.sum(valid.astype(jnp.float32))


if __name__ == "__main__":
    key = jax.random.PRNGKey(0)
    k1, k2, k3 = jax.random.split(key, 3)

    B, C, H, W = 2, 4, 16, 16  # NCHW, as in the PyTorch module
    pred = jax.random.normal(k1, (B, C, H, W), jnp.float32)
    # target: mix of positive (valid) and non-positive (invalid) pixels
    target = jax.random.normal(k2, (B, C, H, W), jnp.float32) + 0.5
    # conf_inv: strictly positive confidence-inverse map
    conf_inv = jax.random.uniform(k3, (B, C, H, W), jnp.float32,
                                  minval=0.1, maxval=2.0)
    conf_lambda = 0.5

    loss = uncertainty_l1_loss(pred, target, conf_inv, conf_lambda)
    loss = jax.block_until_ready(loss)

    ref = _reference(pred, target, conf_inv, conf_lambda)
    assert jnp.allclose(loss, ref, rtol=1e-4, atol=1e-5), (loss, ref)

    print("KERNEL_OK")
</pallas_src>

<mosaic_0001>
module attributes {stable_mosaic.version = 11 : i64} {
  func.func @_loss_kernel(%arg0: i32, %arg1: i32, %arg2: memref<1xi32, #tpu.memory_space<smem>>, %arg3: memref<1xf32, #tpu.memory_space<smem>>, %arg4: memref<16x128xf32, #tpu.memory_space<vmem>>, %arg5: memref<16x128xf32, #tpu.memory_space<vmem>>, %arg6: memref<16x128xf32, #tpu.memory_space<vmem>>, %arg7: memref<8x128xf32, #tpu.memory_space<vmem>>, %arg8: memref<8x128xf32, #tpu.memory_space<vmem>>) attributes {dimension_semantics = [#tpu.dimension_semantics<parallel>, #tpu.dimension_semantics<arbitrary>], iteration_bounds = array<i64: 2, 1>, scalar_prefetch = 0 : i64, scratch_operands = 0 : i64, tpu.core_type = #tpu.core_type<tc>, window_params = [{transform_indices = @transform_0, window_bounds = array<i64: 1>}, {transform_indices = @transform_1, window_bounds = array<i64: 1>}, {transform_indices = @transform_2, window_bounds = array<i64: 16, 128>}, {transform_indices = @transform_3, window_bounds = array<i64: 16, 128>}, {transform_indices = @transform_4, window_bounds = array<i64: 16, 128>}, {transform_indices = @transform_5, window_bounds = array<i64: 8, 128>}, {transform_indices = @transform_6, window_bounds = array<i64: 8, 128>}]} {
    %c0_i32 = arith.constant 0 : i32
    %0 = arith.cmpi eq, %arg1, %c0_i32 : i32
    %1 = arith.extui %0 : i1 to i32
    %c0_i32_0 = arith.constant 0 : i32
    %2 = arith.cmpi ne, %1, %c0_i32_0 : i32
    scf.if %2 {
      %cst_22 = arith.constant 0.000000e+00 : f32
      %47 = vector.broadcast %cst_22 : f32 to vector<8x128xf32>
      %c0_23 = arith.constant 0 : index
      %c0_24 = arith.constant 0 : index
      %48 = vector.load %arg7[%c0_23, %c0_24] : memref<8x128xf32, #tpu.memory_space<vmem>>, vector<8x128xf32>
      tpu.vector_store %arg7[%c0_23, %c0_24], %47 {strides = array<i32>} : memref<8x128xf32, #tpu.memory_space<vmem>>, vector<8x128xf32>,
      %cst_25 = arith.constant 0.000000e+00 : f32
      %49 = vector.broadcast %cst_25 : f32 to vector<8x128xf32>
      %c0_26 = arith.constant 0 : index
      %c0_27 = arith.constant 0 : index
      %50 = vector.load %arg8[%c0_26, %c0_27] : memref<8x128xf32, #tpu.memory_space<vmem>>, vector<8x128xf32>
      tpu.vector_store %arg8[%c0_26, %c0_27], %49 {strides = array<i32>} : memref<8x128xf32, #tpu.memory_space<vmem>>, vector<8x128xf32>,
    } else {
    }
    %c0 = arith.constant 0 : index
    %3 = memref.load %arg2[%c0] : memref<1xi32, #tpu.memory_space<smem>>
    %c0_1 = arith.constant 0 : index
    %4 = memref.load %arg3[%c0_1] : memref<1xf32, #tpu.memory_space<smem>>
    %c0_2 = arith.constant 0 : index
    %c0_3 = arith.constant 0 : index
    %5 = vector.load %arg5[%c0_2, %c0_3] : memref<16x128xf32, #tpu.memory_space<vmem>>, vector<16x128xf32>
    %c0_4 = arith.constant 0 : index
    %c0_5 = arith.constant 0 : index
    %6 = vector.load %arg4[%c0_4, %c0_5] : memref<16x128xf32, #tpu.memory_space<vmem>>, vector<16x128xf32>
    %c0_6 = arith.constant 0 : index
    %c0_7 = arith.constant 0 : index
    %7 = vector.load %arg6[%c0_6, %c0_7] : memref<16x128xf32, #tpu.memory_space<vmem>>, vector<16x128xf32>
    %8 = vector.broadcast %4 : f32 to vector<16x128xf32>
    %9 = arith.mulf %7, %8 : vector<16x128xf32>
    %c1_i32 = arith.constant 1 : i32
    %10 = arith.muli %arg0, %c1_i32 : i32
    %11 = arith.addi %10, %arg1 : i32
    %c2048_i32 = arith.constant 2048 : i32
    %12 = arith.muli %11, %c2048_i32 : i32
    %13 = tpu.iota {dimensions = array<i32: 0>} : vector<16x128xi32>
    %14 = tpu.iota {dimensions = array<i32: 1>} : vector<16x128xi32>
    %c128_i32 = arith.constant 128 : i32
    %15 = vector.broadcast %c128_i32 : i32 to vector<16x128xi32>
    %16 = arith.muli %13, %15 : vector<16x128xi32>
    %17 = arith.addi %16, %14 : vector<16x128xi32>
    %18 = arith.subi %3, %12 : i32
    %19 = vector.broadcast %18 : i32 to vector<16x128xi32>
    %20 = arith.cmpi slt, %17, %19 : vector<16x128xi32>
    %cst = arith.constant 0.000000e+00 : f32
    %21 = vector.broadcast %cst : f32 to vector<16x128xf32>
    %22 = arith.cmpf ogt, %5, %21 : vector<16x128xf32>
    %23 = arith.andi %22, %20 : vector<16x128xi1>
    %24 = arith.subf %5, %6 : vector<16x128xf32>
    %25 = arith.divf %24, %9 : vector<16x128xf32>
    %26 = arith.mulf %25, %25 : vector<16x128xf32>
    %27 = math.log1p %9 : vector<16x128xf32>
    %cst_8 = arith.constant 4.000000e+00 : f32
    %28 = vector.broadcast %cst_8 : f32 to vector<16x128xf32>
    %29 = arith.mulf %28, %27 : vector<16x128xf32>
    %30 = arith.addf %26, %29 : vector<16x128xf32>
    %31 = math.sqrt %30 : vector<16x128xf32>
    %cst_9 = arith.constant 0.000000e+00 : f32
    %32 = vector.broadcast %cst_9 : f32 to vector<16x128xf32>
    %33 = arith.select %23, %31, %32 : vector<16x128xi1>, vector<16x128xf32>
    %cst_10 = arith.constant 1.000000e+00 : f32
    %cst_11 = arith.constant 0.000000e+00 : f32
    %34 = vector.broadcast %cst_10 : f32 to vector<16x128xf32>
    %35 = vector.broadcast %cst_11 : f32 to vector<16x128xf32>
    %36 = arith.select %23, %34, %35 : vector<16x128xi1>, vector<16x128xf32>
    %c0_12 = arith.constant 0 : index
    %c0_13 = arith.constant 0 : index
    %37 = vector.load %arg7[%c0_12, %c0_13] : memref<8x128xf32, #tpu.memory_space<vmem>>, vector<8x128xf32>
    %38 = vector.shape_cast %33 : vector<16x128xf32> to vector<2x8x128xf32>
    %cst_14 = arith.constant dense<0.000000e+00> : vector<8x128xf32>
    %39 = vector.multi_reduction <add>, %38, %cst_14 [0] : vector<2x8x128xf32> to vector<8x128xf32>
    %40 = arith.addf %37, %39 : vector<8x128xf32>
    %c0_15 = arith.constant 0 : index
    %c0_16 = arith.constant 0 : index
    %41 = vector.load %arg7[%c0_15, %c0_16] : memref<8x128xf32, #tpu.memory_space<vmem>>, vector<8x128xf32>
    tpu.vector_store %arg7[%c0_15, %c0_16], %40 {strides = array<i32>} : memref<8x128xf32, #tpu.memory_space<vmem>>, vector<8x128xf32>,
    %c0_17 = arith.constant 0 : index
    %c0_18 = arith.constant 0 : index
    %42 = vector.load %arg8[%c0_17, %c0_18] : memref<8x128xf32, #tpu.memory_space<vmem>>, vector<8x128xf32>
    %43 = vector.shape_cast %36 : vector<16x128xf32> to vector<2x8x128xf32>
    %cst_19 = arith.constant dense<0.000000e+00> : vector<8x128xf32>
    %44 = vector.multi_reduction <add>, %43, %cst_19 [0] : vector<2x8x128xf32> to vector<8x128xf32>
    %45 = arith.addf %42, %44 : vector<8x128xf32>
    %c0_20 = arith.constant 0 : index
    %c0_21 = arith.constant 0 : index
    %46 = vector.load %arg8[%c0_20, %c0_21] : memref<8x128xf32, #tpu.memory_space<vmem>>, vector<8x128xf32>
    tpu.vector_store %arg8[%c0_20, %c0_21], %45 {strides = array<i32>} : memref<8x128xf32, #tpu.memory_space<vmem>>, vector<8x128xf32>,
    return
  }
  func.func @transform_0(%arg0: i32, %arg1: i32) -> i32 {
    %c0_i32 = arith.constant 0 : i32
    %c0_i32_0 = arith.constant 0 : i32
    return %c0_i32 : i32
  }
  func.func @transform_1(%arg0: i32, %arg1: i32) -> i32 {
    %c0_i32 = arith.constant 0 : i32
    %c0_i32_0 = arith.constant 0 : i32
    return %c0_i32 : i32
  }
  func.func @transform_2(%arg0: i32, %arg1: i32) -> (i32, i32) {
    %c1_i32 = arith.constant 1 : i32
    %0 = arith.muli %arg0, %c1_i32 : i32
    %1 = arith.addi %0, %arg1 : i32
    %c0_i32 = arith.constant 0 : i32
    %2 = arith.minsi %1, %c0_i32 : i32
    %c0_i32_0 = arith.constant 0 : i32
    %c0_i32_1 = arith.constant 0 : i32
    return %2, %c0_i32_0 : i32, i32
  }
  func.func @transform_3(%arg0: i32, %arg1: i32) -> (i32, i32) {
    %c1_i32 = arith.constant 1 : i32
    %0 = arith.muli %arg0, %c1_i32 : i32
    %1 = arith.addi %0, %arg1 : i32
    %c0_i32 = arith.constant 0 : i32
    %2 = arith.minsi %1, %c0_i32 : i32
    %c0_i32_0 = arith.constant 0 : i32
    %c0_i32_1 = arith.constant 0 : i32
    return %2, %c0_i32_0 : i32, i32
  }
  func.func @transform_4(%arg0: i32, %arg1: i32) -> (i32, i32) {
    %c1_i32 = arith.constant 1 : i32
    %0 = arith.muli %arg0, %c1_i32 : i32
    %1 = arith.addi %0, %arg1 : i32
    %c0_i32 = arith.constant 0 : i32
    %2 = arith.minsi %1, %c0_i32 : i32
    %c0_i32_0 = arith.constant 0 : i32
    %c0_i32_1 = arith.constant 0 : i32
    return %2, %c0_i32_0 : i32, i32
  }
  func.func @transform_5(%arg0: i32, %arg1: i32) -> (i32, i32) {
    %c0_i32 = arith.constant 0 : i32
    %c0_i32_0 = arith.constant 0 : i32
    return %arg0, %c0_i32 : i32, i32
  }
  func.func @transform_6(%arg0: i32, %arg1: i32) -> (i32, i32) {
    %c0_i32 = arith.constant 0 : i32
    %c0_i32_0 = arith.constant 0 : i32
    return %arg0, %c0_i32 : i32, i32
  }
}

</mosaic_0001>

<bundles_post_ra>
// kernel: tpu_custom_call.1
= control target key start
LH: loop header
LB: loop body
LE: loop exit
PB: predicated region body
PF: predicated region fallthrough
CT: control target
= control target key end

     0   :  { %s1446_s0 = inlined_call_operand.<no memory space> [shape: s32[1], index: 0, kind: input, shape index: {}]   ;;  %s1447_s1 = inlined_call_operand.<no memory space> [shape: f32[1], index: 1, kind: input, shape index: {}]   ;;  %s1448_s2 = inlined_call_operand.hbm [shape: f32[16,128], index: 2, kind: input, shape index: {}]   ;;  %s1449_s3 = inlined_call_operand.hbm [shape: f32[16,128], index: 3, kind: input, shape index: {}]   ;;  %s1450_s4 = inlined_call_operand.hbm [shape: f32[16,128], index: 4, kind: input, shape index: {}]   ;;  %s1451_s5 = inlined_call_operand.hbm [shape: f32[16,128], index: 5, kind: output, shape index: {0}]   ;;  %s1452_s6 = inlined_call_operand.hbm [shape: f32[16,128], index: 6, kind: output, shape index: {1}]  }
   0x1   :  { %1460 = sst [smem:[#allocation21_spill]] %s1449_s3 }
   0x2   :  { %12 = sst [smem:[#allocation2]] %s1446_s0 }
   0x3   :  { %13 = sst [smem:[#allocation3]] %s1447_s1 }
   0x4   :  { %14 = vsyncpa [#allocation5], 0 }
   0x5   :  { %16 = vsyncpa [#allocation5 + $0x1], 0 }
   0x6   :  { %17 = vsyncpa [#allocation8], 0 }
   0x7   :  { %19 = vsyncpa [#allocation8 + $0x1], 0 }
   0x8   :  { %20 = vsyncpa [#allocation6], 0 }
   0x9   :  { %22 = vsyncpa [#allocation6 + $0x1], 0 }
   0xa   :  { %23 = vsyncpa [#allocation12], 0 }
   0xb   :  { %25 = vsyncpa [#allocation12 + $0x1], 0  ;;  %s1113_s25 = smov 0   ;;  %s1115_s26 = smov 0  }
   0xc   :  { %s1117_s27 = smov 0   ;;  %s1119_s28 = smov 0  }
   0xd   :  { %s1121_s0 = smov 0   ;;  %s1123_s29 = smov 0  }
   0xe   :  { %s1125_s1 = smov 0   ;;  %s1127_s30 = smov 0  }
   0xf LB: > { %1461 = sst [smem:[#allocation17_spill]] %s1042_s27  ;;  %s1152_s7 = sadd.s32 4294967295, %s1062_s30   ;;  %s1062_s30 = sphi %s1127_s30, %s31_s30   ;;  %s1058_s1 = sphi %s1125_s1, %s1488_s1   ;;  %s1054_s29 = sphi %s1123_s29, %s1487_s29   ;;  %s1050_s0 = sphi %s1121_s0, %s1436_s0   ;;  %s1046_s28 = sphi %s1119_s28, %s1491_s28   ;;  %s1042_s27 = sphi %s1117_s27, %s1486_s27   ;;  %s1038_s26 = sphi %s1115_s26, %s1490_s26   ;;  %s1034_s25 = sphi %s1113_s25, %s1489_s25  }
  0x10   : > { %1462 = sst [smem:[#allocation18_spill]] %s1058_s1  ;;  %s689_s8 = sadd.s32 4294967294, %s1062_s30  }
  0x11   : > { %s43_s9 = sadd.s32 1, %s1058_s1  ;;  %p1031_p1 = scmp.ne.s32.totalorder %s1050_s0, 0 }
  0x12   : > { %p45_p0 = scmp.ge.s32.totalorder %s43_s9, 2  ;;  %p106_p2 = scmp.eq.s32.totalorder %s1062_s30, 0 }
  0x13   : > { %p111_p3 = scmp.ne.s32.totalorder %s1050_s0, %s1046_s28  ;;  %p112_p5 = scmp.eq.s32.totalorder %s1152_s7, 0 }
  0x14   : > { %s1493_s9 = smov (%p45_p0, %s43_s9), 0  ;;  %p1161_p4 = por %p1031_p1, %p106_p2 }
  0x15   : > { %1463 = sst [smem:[#allocation19_spill]] %s1493_s9  ;;  %p1166_p6 = por %p112_p5, %p111_p3 }
  0x16   : > { %s185_s12 = ssub.s32 %s1058_s1, %s1493_s9  ;;  %s188_s13 = sadd.s32 1, %s1042_s27 }
  0x17   : > { %s1465_s11 = scalar_select %p1166_p6, 1, 0 }
  0x18   : > { %p186_p7 = scmp.eq.s32.totalorder %s185_s12, 0  ;;  %p198_p8 = scmp.ne.s32.totalorder %s1042_s27, %s1038_s26 }
  0x19   : > { %p199_p9 = scmp.eq.s32.totalorder %s1152_s7, 1  ;;  %p204_p10 = scmp.ne.s32.totalorder %s1038_s26, %s1034_s25 }
  0x1a   : > { %s1174_s14 = scalar_select %p186_p7, %s1042_s27, %s188_s13  }
  0x1b   : > { %p205_p11 = scmp.eq.s32.totalorder %s689_s8, 1  ;;  %p1181_p12 = por %p199_p9, %p198_p8 }
  0x1c   : > { %1466 = sst [smem:[#allocation20_spill]] %s1174_s14  ;;  %p744_p1 = scmp.lt.s32.totalorder %s1062_s30, 2 }
  0x1d   : > { %s1467_s15 = scalar_select %p1181_p12, 1, 0 }
  0x1e   : > { %p1186_p0 = por %p205_p11, %p204_p10  ;;  %p1193_p2 = pnand %p744_p1, %p1161_p4 }
  0x1f   : > { %s281_s18 = sand.u32 1, %s1062_s30   ;;  %s1064_s19 = smov [#allocation7]  }
  0x20   : > { %s1468_s16 = scalar_select %p1186_p0, 1, 0 }
  0x21   : > { %s1469_s17 = scalar_select %p1193_p2, 1, 0 }
  0x22   : > { %s295_s20 = sshll.u32 %s1064_s19, 4  ;;  %s1201_s21 = scalar_lea.sflag [#allocation8], %s281_s18  ;;  %s1198_s20 = int_to_ptr.vmem [resolvable:$true] %s295_s20 }
  0x23   : > { %s1470_s3 = sld [smem:[#allocation21_spill]]  ;;  %p1211_p5 = pneg %p1193_p2 }
  0x29   : > { %s833_s24 = scalar_lea.hbm %s1470_s3, 256 }
  0x2a   : > { %p834_p4 = scmp.ne.s32.totalorder %s1470_s3, %s833_s24  ;;  %p840_p9 = scmp.lt.u32.totalorder %s833_s24, %s833_s24 }
  0x2b   : > { %p842_p10 = scmp.lt.u32.totalorder %s833_s24, %s1470_s3 }
  0x2c   : > { %p836_p7 = pnand %p1211_p5, %p834_p4 }
  0x2d   : > { %p843_p11 = por %p842_p10, %p840_p9 }
  0x2e   : > { %p837_p8 = pneg %p836_p7 }
  0x30   : > { %p844_p1 = pnand %p843_p11, %p837_p8 }
  0x32   : > { %847 = shalt.err (!%p844_p1)
}
  0x33   : > { %s848_s18 = scalar_lea.vmem %s1198_s20, 256  ;;  %s855_s19 = scalar_lea.vmem %s1198_s20, 512 }
  0x34   : > { %p849_p13 = scmp.ne.s32.totalorder %s1198_s20, %s848_s18  ;;  %p856_p4 = scmp.lt.s32.totalorder %s1198_s20, %s1198_s20 }
  0x35   : > { %p857_p7 = scmp.lt.s32.totalorder %s855_s19, %s848_s18 }
  0x36   : > { %p851_p3 = pnand %p849_p13, %p1211_p5 }
  0x37   : > { %p858_p12 = por %p857_p7, %p856_p4 }
  0x38   : > { %p852_p0 = pneg %p851_p3 }
  0x3a   : > { %p859_p6 = pnand %p858_p12, %p852_p0 }
  0x3c   : > { %862 = shalt.err (!%p859_p6)
}
  0x3d   : > { %s1065_s22 = smov 128   ;;  %s1066_s23 = smov 8  }
  0x3e   : > { %733 = dma.hbm_to_vmem [thread:$0]  (!%p1193_p2), %s1470_s3, 256, %s1198_s20, %s1201_s21, %s1065_s22, %s1065_s22, %s1066_s23  }
  0x3f   : > { %p327_p13 = scmp.lt.s32.totalorder %s1062_s30, 3  ;;  %p1472_p3 = scmp.ge.s32.totalorder %s1062_s30, 1 }
  0x40   : > { %s1067_s12 = smov [#allocation4]   ;;  %s863_s9 = scalar_lea.hbm %s1448_s2, 256 }
  0x41   : > { %p1240_p12 = pnand %p1472_p3, %p327_p13  ;;  %s271_s13 = sshll.u32 %s1067_s12, 4  ;;  %s272_s13 = int_to_ptr.vmem [resolvable:$true] %s271_s13 }
  0x42   : > { %p864_p6 = scmp.ne.s32.totalorder %s1448_s2, %s863_s9  ;;  %p870_p9 = scmp.lt.u32.totalorder %s863_s9, %s863_s9 }
  0x43   : > { %s1473_s8 = scalar_select %p1240_p12, 1, 0 }
  0x44   : > { %p866_p0 = pnand %p864_p6, %p1211_p5  ;;  %p872_p10 = scmp.lt.u32.totalorder %s863_s9, %s1448_s2 }
  0x46   : > { %p867_p8 = pneg %p866_p0  ;;  %p873_p11 = por %p872_p10, %p870_p9 }
  0x48   : > { %p874_p1 = pnand %p873_p11, %p867_p8 }
  0x4a   : > { %877 = shalt.err (!%p874_p1)
}
  0x4b   : > { %s878_s28 = scalar_lea.vmem %s272_s13, 256  ;;  %s885_s12 = scalar_lea.vmem %s272_s13, 512 }
  0x4c   : > { %p879_p4 = scmp.ne.s32.totalorder %s272_s13, %s878_s28  ;;  %p886_p3 = scmp.lt.s32.totalorder %s272_s13, %s272_s13 }
  0x4d   : > { %p887_p12 = scmp.lt.s32.totalorder %s885_s12, %s878_s28 }
  0x4e   : > { %p881_p7 = pnand %p879_p4, %p1211_p5 }
  0x4f   : > { %p888_p2 = por %p887_p12, %p886_p3 }
  0x50   : > { %p882_p13 = pneg %p881_p7 }
  0x52   : > { %p889_p6 = pnand %p888_p2, %p882_p13 }
  0x54   : > { %892 = shalt.err (!%p889_p6)
}
  0x55   : > { %p1474_p0 = scmp.ne.s32.totalorder %s1469_s17, 0  ;;  %s1068_s14 = smov [#allocation9]  }
  0x56   : > { %s319_s18 = sshll.u32 %s1068_s14, 4  ;;  %s893_s24 = scalar_lea.hbm %s1450_s4, 256  ;;  %s320_s18 = int_to_ptr.vmem [resolvable:$true] %s319_s18 }
  0x57   : > { %730 = dma.hbm_to_vmem [thread:$0]  (!%p1474_p0), %s1448_s2, 256, %s272_s13, [#allocation5], %s1065_s22, %s1065_s22, %s1066_s23  }
  0x58   : > { %p894_p2 = scmp.ne.s32.totalorder %s1450_s4, %s893_s24  ;;  %p900_p9 = scmp.lt.u32.totalorder %s893_s24, %s893_s24 }
  0x59   : > { %p902_p10 = scmp.lt.u32.totalorder %s893_s24, %s1450_s4 }
  0x5a   : > { %p896_p12 = pnand %p894_p2, %p1211_p5 }
  0x5b   : > { %p903_p11 = por %p902_p10, %p900_p9 }
  0x5c   : > { %p897_p8 = pneg %p896_p12 }
  0x5e   : > { %p904_p1 = pnand %p903_p11, %p897_p8 }
  0x60   : > { %907 = shalt.err (!%p904_p1)
}
  0x61   : > { %s908_s13 = scalar_lea.vmem %s320_s18, 256  ;;  %s915_s1 = scalar_lea.vmem %s320_s18, 512 }
  0x62   : > { %p909_p4 = scmp.ne.s32.totalorder %s320_s18, %s908_s13  ;;  %p916_p3 = scmp.lt.s32.totalorder %s320_s18, %s320_s18 }
  0x63   : > { %p917_p6 = scmp.lt.s32.totalorder %s915_s1, %s908_s13 }
  0x64   : > { %p911_p7 = pnand %p909_p4, %p1211_p5 }
  0x65   : > { %p918_p0 = por %p917_p6, %p916_p3 }
  0x66   : > { %p912_p13 = pneg %p911_p7 }
  0x68   : > { %p919_p2 = pnand %p918_p0, %p912_p13 }
  0x6a   : > { %922 = shalt.err (!%p919_p2)
}
  0x6b   : > { %p1475_p12 = scmp.ne.s32.totalorder %s1469_s17, 0  ;;  %p1476_p8 = scmp.ne.s32.totalorder %s1473_s8, 0 }
  0x6c   : > { %s333_s10 = sand.u32 (!%p1476_p8), 1, %s1050_s0   ;;  %p1477_p5 = scmp.ne.s32.totalorder (!%p1476_p8), %s1465_s11, 0 }
  0x6d   : > { %736 = dma.hbm_to_vmem [thread:$0]  (!%p1475_p12), %s1450_s4, 256, %s320_s18, %s1201_s21, %s1065_s22, %s1065_s22, %s1066_s23  }
  0x6e   : > { %331 = sbr.rel (%p1476_p8) target bundleno = 192 (0xc0), region = 40  ;;  %s1290_s9 = sshll.u32 (!%p1476_p8), %s333_s10, 4 }
  0x6f   : > { %s334_s14 = scalar_lea.sflag (!%p1476_p8), [#allocation5], %s333_s10  ;;  %s337_s19 = scalar_lea.vmem (!%p1476_p8), [#allocation4], %s1290_s9 }
  0x75   : > { %1016 = dma.done.wait (%p1477_p5), %s334_s14, 256  }
  0x76   : > { %1018 = vsyncadd (%p1477_p5), %s334_s14, 4294967040  ;;  %s342_s17 = sand.u32 1, %s1152_s7   ;;  %s346_s22 = scalar_lea.vmem [#allocation7], %s1290_s9 }
  0x77   : > { %s343_s21 = scalar_lea.sflag [#allocation8], %s342_s17 }
  0x78   : > { %1020 = dma.done.wait (%p1477_p5), %s343_s21, 512  }
  0x79   : > { %1022 = vsyncadd (%p1477_p5), %s343_s21, 4294966784  ;;  %v430_v0 = vlaneseq  ;;  %s417_s23 = sld [smem:[#allocation2]]  ;;  %s707_s18 = sshll.u32 %s1054_s29, 11  ;;  %v1307_v7 = vld [vmem:[%s346_s22] sm:$0xff]  ;;  %v1310_v8 = vld [vmem:[%s346_s22 + $0x8] sm:$0xff]  ;;  %v1069_v20 = vmov 0.0  }
  0x7a   : > { %s418_s8 = sld [smem:[#allocation3]]  ;;  %s1305_s20 = sand.u32 1, %s1038_s26   ;;  %vm443_vm0 = vcmp.gt.f32.partialorder %v1307_v7, 0.0  ;;  %vm444_vm1 = vcmp.gt.f32.partialorder %v1310_v8, 0.0  ;;  %v421_v24 = vld [vmem:[%s337_s19] sm:$0xff]  ;;  %v422_v27 = vld [vmem:[%s337_s19 + $0x8] sm:$0xff] }
  0x7b   : > { %v431_v1 = vshrl.u32 %v430_v0, 7  ;;  %v434_v2 = vand.u32 127, %v430_v0  ;;  %s705_s11 = sshll.u32 %s1305_s20, 3  ;;  %s355_s24 = scalar_lea.vmem [#allocation9], %s1290_s9  ;;  %v447_v28 = vsub.f32 %v1307_v7, %v421_v24  ;;  %v448_v30 = vsub.f32 %v1310_v8, %v422_v27 }
  0x7c   : > { %v423_v9 = vld [vmem:[%s355_s24] sm:$0xff]  ;;  %v424_v10 = vld [vmem:[%s355_s24 + $0x8] sm:$0xff]  ;;  %s710_s28 = sshll.u32 %s1054_s29, 7  ;;  %s398_s12 = scalar_lea.vmem [#allocation11], %s705_s11 }
  0x7d   : > { %v432_v3 = vadd.s32 8, %v431_v1  ;;  %v435_v4 = vmul.u32 128, %v431_v1  ;;  %s535_s13 = sshll.u32 %s398_s12, 4  ;;  %s1349_s27 = scalar_lea.hbm %s1452_s6, %s710_s28  ;;  %s1351_s13 = int_to_ptr.vmem [resolvable:$true] %s535_s13 }
  0x7e   : > { %s509_s10 = scalar_lea.sflag [#allocation12], %s1305_s20  ;;  %s923_s9 = scalar_lea.vmem %s1351_s13, 128 }
  0x7f   : > { %v436_v5 = vmul.u32 128, %v432_v3  ;;  %v437_v6 = vadd.s32 %v435_v4, %v434_v2  ;;  %s439_s7 = ssub.s32 %s417_s23, %s707_s18  ;;  %p924_p0 = scmp.ne.s32.totalorder %s1351_s13, %s923_s9 }
  0x80   : > { %v425_v11 = vstv %s418_s8  ;;  %v440_v15 = vstv %s439_s7  ;;  %p1482_p9 = scmp.ne.s32.totalorder %s1467_s15, 0  ;;  %s1070_s14 = smov [#allocation11]  }
  0x81   : > { %v438_v12 = vadd.s32 %v436_v5, %v434_v2  ;;  %v1314_v13 = vmul.f32 %v425_v11, %v423_v9  ;;  %v1316_v14 = vmul.f32 %v425_v11, %v424_v10  ;;  %vm441_vm2 = vcmp.lt.s32.totalorder %v437_v6, %v440_v15  ;;  %s927_s19 = sshll.u32 %s1070_s14, 4  ;;  %s928_s19 = int_to_ptr.vmem [resolvable:$false] %s927_s19 }
  0x82   : > { %vm1319_vm4 = vmand %vm443_vm0, %vm441_vm2  ;;  %p925_p10 = pnand %p924_p0, %p1482_p9  ;;  %s929_s17 = scalar_lea.vmem %s928_s19, 256 }
  0x83   : > { %vm442_vm3 = vcmp.lt.s32.totalorder %v438_v12, %v440_v15  ;;  %821 = vrcp.f32 %v1314_v13  ;;  %v455_v17 = vadd.f32 1.0, %v1314_v13  ;;  %v464_v19 = vadd.f32 1.0, %v1316_v14  ;;  %p930_p1 = scmp.lt.s32.totalorder %s1351_s13, %s928_s19  ;;  %p931_p4 = scmp.lt.s32.totalorder %s929_s17, %s923_s9 }
  0x84   : > { %vm1325_vm5 = vmand %vm444_vm1, %vm442_vm3  ;;  %823 = vrcp.f32 %v1316_v14  ;;  %v493_v21 = vsel %vm1319_vm4, 1.0, %v1069_v20  ;;  %v458_v22 = vmul.f32 -0.5, %v1314_v13  ;;  %v467_v25 = vmul.f32 -0.5, %v1316_v14  ;;  %p926_p11 = pneg %p925_p10 }
  0x85   : > { %825 = vlog2.f32 %v455_v17  ;;  %v494_v23 = vsel %vm1325_vm5, 1.0, %v1069_v20  ;;  %v461_v31 = vand.u32 2147483647, %v1314_v13  ;;  %v470_v33 = vand.u32 2147483647, %v1316_v14  ;;  %p932_p7 = por %p931_p4, %p930_p1 }
  0x86   : > { %827 = vlog2.f32 %v464_v19  ;;  %v500_v26 = vadd.f32 %v494_v23, %v493_v21  ;;  %v459_v29 = vadd.f32 1.0, %v458_v22  ;;  %v468_v32 = vadd.f32 1.0, %v467_v25 }
  0x87   : > { %p933_p13 = pnand %p932_p7, %p926_p11 }
  0x88   : > { %502 = vst [vmem:[%s398_s12] sm:$0xff] %v500_v26 }
  0x89   : > { %936 = shalt.err (!%p933_p13)
}
  0x8a   : > { %s937_s21 = scalar_lea.hbm %s1349_s27, 128  ;;  %s941_s8 = scalar_lea.hbm %s1452_s6, 256 }
  0x8b   : > { %p938_p3 = scmp.ne.s32.totalorder %s1349_s27, %s937_s21  ;;  %p942_p12 = scmp.lt.u32.totalorder %s1349_s27, %s1452_s6 }
  0x8c   : > { %p943_p8 = scmp.lt.u32.totalorder %s941_s8, %s937_s21  ;;  %p945_p0 = scmp.lt.u32.totalorder %s937_s21, %s1349_s27 }
  0x8d   : > { %p939_p6 = pnand %p938_p3, %p1482_p9 }
  0x8e   : > { %p944_p5 = por %p943_p8, %p942_p12 }
  0x8f   : > { %p940_p2 = pneg %p939_p6 }
  0x90   : > { %p946_p10 = por %p945_p0, %p944_p5 }
  0x92   : > { %p947_p11 = pnand %p946_p10, %p940_p2 }
  0x94   : > { %950 = shalt.err (!%p947_p11)
}
  0x95   : > { %724 = dma.vmem_to_hbm [thread:$0]  (%p1482_p9), %s1351_s13, 128, %s1349_s27, %s509_s10   ;;  %v822_v34 = vpop.eup %821  ;;  %v460_v37 = vmul.f32 %v459_v29, %v1314_v13  ;;  %vm462_vm6 = vcmp.lt.f32.partialorder %v461_v31, 0.0004427343  ;;  %v469_v40 = vmul.f32 %v468_v32, %v1316_v14  ;;  %vm471_vm7 = vcmp.lt.f32.partialorder %v470_v33, 0.0004427343 }
  0x96   : > { %v824_v35 = vpop.eup %823  ;;  %v450_v36 = vmul.f32 %v822_v34, %v447_v28  ;;  %s391_s24 = scalar_lea.vmem [#allocation10], %s705_s11  ;;  %s1392_s3 = scalar_lea.hbm %s1451_s5, %s710_s28 }
  0x97   : > { %v826_v38 = vpop.eup %825  ;;  %v452_v39 = vmul.f32 %v824_v35, %v448_v30  ;;  %s522_s12 = sshll.u32 %s391_s24, 4  ;;  %s504_s27 = scalar_lea.sflag [#allocation6], %s1305_s20  ;;  %s1394_s12 = int_to_ptr.vmem [resolvable:$true] %s522_s12 }
  0x98   : > { %v828_v41 = vpop.eup %827  ;;  %v457_v42 = vmul.f32 0.6931472, %v826_v38  ;;  %v453_v43 = vmul.f32 %v450_v36, %v450_v36  ;;  %s951_s10 = scalar_lea.vmem %s1394_s12, 128  ;;  %s1071_s11 = smov [#allocation10]  }
  0x99   : > { %v466_v44 = vmul.f32 0.6931472, %v828_v41  ;;  %v454_v45 = vmul.f32 %v452_v39, %v452_v39  ;;  %p952_p1 = scmp.ne.s32.totalorder %s1394_s12, %s951_s10  ;;  %s955_s9 = sshll.u32 %s1071_s11, 4  ;;  %s956_s9 = int_to_ptr.vmem [resolvable:$false] %s955_s9 }
  0x9a   : > { %v463_v46 = vsel %vm462_vm6, %v460_v37, %v457_v42  ;;  %s957_s29 = scalar_lea.vmem %s956_s9, 256  ;;  %p958_p13 = scmp.lt.s32.totalorder %s1394_s12, %s956_s9 }
  0x9b   : > { %v472_v47 = vsel %vm471_vm7, %v469_v40, %v466_v44  ;;  %v473_v48 = vmul.f32 4.0, %v463_v46  ;;  %p953_p4 = pnand %p952_p1, %p1482_p9  ;;  %p959_p3 = scmp.lt.s32.totalorder %s957_s29, %s951_s10 }
  0x9c   : > { %v474_v49 = vmul.f32 4.0, %v472_v47 }
  0x9d   : > { %v475_v50 = vadd.f32 %v473_v48, %v453_v43  ;;  %p954_p7 = pneg %p953_p4  ;;  %p960_p6 = por %p959_p3, %p958_p13 }
  0x9e   : > { %v476_v51 = vadd.f32 %v474_v49, %v454_v45 }
  0x9f   : > { %829 = vrsqrt.f32 %v475_v50  ;;  %vm479_vm8 = vcmp.eq.f32.partialorder %v475_v50, inf  ;;  %v482_v53 = vand.u32 2147483648, %v475_v50  ;;  %vm481_vm9 = vcmp.eq.f32.partialorder %v475_v50, 0.0  ;;  %p961_p2 = pnand %p960_p6, %p954_p7 }
  0xa0   : > { %831 = vrsqrt.f32 %v476_v51  ;;  %vm486_vm10 = vcmp.eq.f32.partialorder %v476_v51, inf  ;;  %v489_v56 = vand.u32 2147483648, %v476_v51  ;;  %vm488_vm11 = vcmp.eq.f32.partialorder %v476_v51, 0.0 }
  0xa9   : > { %v830_v52 = vpop.eup %829 }
  0xaa   : > { %v832_v54 = vpop.eup %831  ;;  %v478_v55 = vmul.f32 %v830_v52, %v475_v50 }
  0xab   : > { %v485_v57 = vmul.f32 %v832_v54, %v476_v51 }
  0xac   : > { %v480_v58 = vsel %vm479_vm8, %v475_v50, %v478_v55 }
  0xad   : > { %v483_v59 = vsel %vm481_vm9, %v482_v53, %v480_v58  ;;  %v487_v60 = vsel %vm486_vm10, %v476_v51, %v485_v57 }
  0xae   : > { %v490_v61 = vsel %vm488_vm11, %v489_v56, %v487_v60  ;;  %v491_v62 = vsel %vm1319_vm4, %v483_v59, 0.0 }
  0xaf   : > { %v492_v63 = vsel %vm1325_vm5, %v490_v61, 0.0 }
  0xb0   : > { %v496_v0 = vadd.f32 %v492_v63, %v491_v62 }
  0xb2   : > { %498 = vst [vmem:[%s391_s24] sm:$0xff] %v496_v0 }
  0xb3   : > { %964 = shalt.err (!%p961_p2)
}
  0xb4   : > { %s965_s20 = scalar_lea.hbm %s1392_s3, 128  ;;  %s969_s19 = scalar_lea.hbm %s1451_s5, 256 }
  0xb5   : > { %p966_p12 = scmp.ne.s32.totalorder %s1392_s3, %s965_s20  ;;  %p970_p0 = scmp.lt.u32.totalorder %s1392_s3, %s1451_s5 }
  0xb6   : > { %p971_p10 = scmp.lt.u32.totalorder %s969_s19, %s965_s20  ;;  %p973_p1 = scmp.lt.u32.totalorder %s965_s20, %s1392_s3 }
  0xb7   : > { %p967_p8 = pnand %p966_p12, %p1482_p9 }
  0xb8   : > { %p972_p11 = por %p971_p10, %p970_p0 }
  0xb9   : > { %p968_p5 = pneg %p967_p8 }
  0xba   : > { %p974_p4 = por %p973_p1, %p972_p11 }
  0xbc   : > { %p975_p7 = pnand %p974_p4, %p968_p5 }
  0xbe   : > { %978 = shalt.err (!%p975_p7)
}
  0xbf   : > { %723 = dma.vmem_to_hbm [thread:$0]  (%p1482_p9), %s1394_s12, 128, %s1392_s3, %s504_s27  }
  0xc0 PF: > { %s547_s22 = sand.u32 1, %s1034_s25   ;;  %p1483_p13 = scmp.ne.s32.totalorder %s1468_s16, 0 }
  0xc1   : > { %p1484_p3 = scmp.ge.s32.totalorder %s1062_s30, 2  ;;  %s548_s23 = scalar_lea.sflag [#allocation6], %s547_s22 }
  0xc3   : > { %p738_p6 = pnand %p1484_p3, %p1483_p13 }
  0xc5   : > { %1024 = dma.done.wait (!%p738_p6), %s548_s23, 128  }
  0xc6   : > { %1026 = vsyncadd (!%p738_p6), %s548_s23, 4294967168  ;;  %s557_s8 = scalar_lea.sflag [#allocation12], %s547_s22 }
  0xc7   : > { %1028 = dma.done.wait (!%p738_p6), %s557_s8, 128  }
  0xc8   : > { %1030 = vsyncadd (!%p738_p6), %s557_s8, 4294967168  ;;  %s31_s30 = sadd.s32 1, %s1062_s30   ;;  %s1485_s15 = sld [smem:[#allocation17_spill]] }
  0xc9   : > { %p28_p2 = scmp.ge.s32.totalorder %s31_s30, 4   ;;  %s1486_s27 = sld [smem:[#allocation20_spill]] }
  0xca   : > { %s1487_s29 = sld [smem:[#allocation18_spill]]  ;;  %s1488_s1 = sld [smem:[#allocation19_spill]] }
  0xcb   : > { %s1489_s25 = smov %s1038_s26  ;;  %s1491_s28 = smov %s1050_s0 }
  0xcc   : > { %s1436_s0 = smov 0   ;;  %30 = sbr.rel (!%p28_p2) target bundleno = 15 (0xf), region = 130 }
  0xce   : > { %s1490_s26 = smov %s1485_s15 }
  0xd3   :  { %562 = vsyncpa [#allocation5], 1 }
  0xd4   :  { %564 = vsyncpa [#allocation5 + $0x1], 1 }
  0xd5   :  { %565 = vsyncpa [#allocation8], 1 }
  0xd6   :  { %567 = vsyncpa [#allocation8 + $0x1], 1 }
  0xd7   :  { %568 = vsyncpa [#allocation6], 1 }
  0xd8   :  { %570 = vsyncpa [#allocation6 + $0x1], 1 }
  0xd9   :  { %571 = vsyncpa [#allocation12], 1 }
  0xda   :  { %573 = vsyncpa [#allocation12 + $0x1], 1 }

</bundles_post_ra>
